<compile_context>
chip_gen: v5e
topology: v5e:2x2
jax: 0.10.0
libtpu: 0.0.40
codegen_flags: <defaults>
</compile_context>

<pallas_src>
import jax
import jax.numpy as jnp
from jax.experimental import pallas as pl
from jax.experimental.pallas import tpu as pltpu


def _round_up(x, m):
    return ((x + m - 1) // m) * m


def _interleave_gate_cols(a, b, H):
    """a, b: (R, 4H) with gate order [i,f,g,o] -> (R, 8H) with column order
    [a_i, b_i, a_f, b_f, a_g, b_g, a_o, b_o] (per-gate interleave)."""
    R = a.shape[0]
    a4 = a.reshape(R, 4, H)
    b4 = b.reshape(R, 4, H)
    return jnp.stack([a4, b4], axis=2).reshape(R, 8 * H)


def _make_kernel(T, Bp, H):
    H2, H4, H6, H8 = 2 * H, 4 * H, 6 * H, 8 * H

    def kernel(xf_ref, wih0_ref, bias_ref, wbig_ref, wfc_ref, bfc_ref, out_ref):
        # ---- preamble: hoisted input projection for all T+1 row blocks ----
        # ((T+1)*Bp, I) @ (I, 8H) + bias.  Layer-0 columns get x@Wih0 + b0,
        # layer-1 columns get just b1 (their Wih0_big columns are zero).
        gin = (jnp.dot(xf_ref[...], wih0_ref[...],
                       preferred_element_type=jnp.float32) + bias_ref[...])

        wbig = wbig_ref[...]   # (2H, 8H), loop-invariant hoist

        lane8 = jax.lax.broadcasted_iota(jnp.int32, (Bp, H8), 1)
        g_mask = (lane8 >= H4) & (lane8 < H6)        # tanh (g) lanes
        lane2 = jax.lax.broadcasted_iota(jnp.int32, (Bp, H2), 1)
        l0_mask = lane2 < H                          # layer-0 half of the state

        def activate(gates):
            # sigmoid(x) = 0.5*tanh(x/2) + 0.5  -> single EUP tanh over 8H lanes
            pre = jnp.where(g_mask, gates, 0.5 * gates)
            th = jnp.tanh(pre)
            return jnp.where(g_mask, th, 0.5 * th + 0.5)

        def cell(gates, c_cat):
            a = activate(gates)
            i_c = a[:, 0:H2]
            f_c = a[:, H2:H4]
            g_c = a[:, H4:H6]
            o_c = a[:, H6:H8]
            c_new = f_c * c_cat + i_c * g_c          # [c0(t+1) | c1(t)]
            h_new = o_c * jnp.tanh(c_new)            # [h0(t+1) | h1(t)]
            return h_new, c_new

        # ---- prologue: step-0 layer-0 gates are just gin(0) (no matmul) ----
        h_cat, c_cat = cell(gin[0:Bp, :], jnp.zeros((Bp, H2), jnp.float32))
        h_cat = jnp.where(l0_mask, h_cat, 0.0)       # h1(-1) = 0
        c_cat = jnp.where(l0_mask, c_cat, 0.0)       # c1(-1) = 0

        # ---- pipelined recurrence: one fused dot per timestep ----
        # Invariant at iteration t: h_cat = [h0(t) | h1(t-1)],
        #                           c_cat = [c0(t) | c1(t-1)].
        # TODO(synk): for large T switch to lax.fori_loop with partial unroll
        # and a VMEM scratch for gin (this fully-unrolled form targets small T).
        for t in range(T):
            row = (t + 1) * Bp                       # static, sublane-aligned
            gates = (jnp.dot(h_cat, wbig, preferred_element_type=jnp.float32)
                     + gin[row:row + Bp, :])
            h_cat, c_cat = cell(gates, c_cat)

        # ---- epilogue: FC on h1(T-1); wfc is zero-padded over the h0 rows so
        # the packed state feeds the MXU directly (no narrow lane extract). ----
        out_ref[...] = (jnp.dot(h_cat, wfc_ref[...],
                                preferred_element_type=jnp.float32)
                        + bfc_ref[...]).astype(out_ref.dtype)

    return kernel


def sequential_body_motion_forward(x, params):
    """x: (B, T, input_size) float32 (batch_first, like PyTorch).
    Returns (B, output_size)."""
    B, T, I = x.shape
    H = params["whh0"].shape[0]
    O = params["wfc"].shape[1]
    Bp = max(8, _round_up(B, 8))          # pad batch to the f32 sublane width

    # Time-major + sublane-padded batch, plus ONE extra zero timestep so the
    # pipelined loop's final iteration reads a valid gin row block (its
    # layer-0 half is finite garbage that is never consumed).  Padded batch
    # rows never mix with real rows and are sliced off at the end.
    x_tm = jnp.transpose(x, (1, 0, 2))
    x_tm = jnp.pad(x_tm, ((0, 1), (0, Bp - B), (0, 0)))
    x_flat = x_tm.reshape((T + 1) * Bp, I)

    # Pack weights (wrapper-side, one-time):
    #  * Wih0_big (I, 8H): layer-0 gate columns interleaved with zero layer-1
    #    columns; bias_big carries b0 in layer-0 slots and b1 in layer-1 slots.
    #  * Wbig (2H, 8H): rows 0:H multiply h0, rows H:2H multiply h1; layer-0
    #    columns = [whh0; 0], layer-1 columns = [wih1; whh1].
    #  * wfc_pad (2H, O): zeros over the h0 half so h_cat @ wfc_pad == h1 @ wfc.
    zi = jnp.zeros((I, 4 * H), jnp.float32)
    zh = jnp.zeros((H, 4 * H), jnp.float32)
    wih0_big = _interleave_gate_cols(params["wih0"], zi, H)
    bias_big = _interleave_gate_cols(params["b0"], params["b1"], H)
    wbig = jnp.concatenate(
        [_interleave_gate_cols(params["whh0"], params["wih1"], H),
         _interleave_gate_cols(zh, params["whh1"], H)], axis=0)
    wfc_pad = jnp.concatenate(
        [jnp.zeros((H, O), jnp.float32), params["wfc"]], axis=0)

    kernel = _make_kernel(T, Bp, H)
    vmem = pltpu.MemorySpace.VMEM
    out = pl.pallas_call(
        kernel,
        out_shape=jax.ShapeDtypeStruct((Bp, O), jnp.float32),
        in_specs=[pl.BlockSpec(memory_space=vmem)] * 6,
        out_specs=pl.BlockSpec(memory_space=vmem),
    )(x_flat, wih0_big, bias_big, wbig, wfc_pad, params["bfc"])
    return out[:B]


def make_params(key, input_size, hidden_size, output_size):
    """Deterministic PyTorch-style init: uniform(-1/sqrt(H), 1/sqrt(H))."""
    H = hidden_size
    bound = 1.0 / jnp.sqrt(jnp.float32(H))
    ks = jax.random.split(key, 8)

    def u(k, shape):
        return jax.random.uniform(k, shape, jnp.float32, -bound, bound)

    return {
        # weights stored transposed: (in_features, 4H) so kernel does x @ W
        "wih0": u(ks[0], (input_size, 4 * H)),
        "whh0": u(ks[1], (H, 4 * H)),
        "b0":   u(ks[2], (1, 4 * H)) + u(ks[3], (1, 4 * H)),  # b_ih + b_hh
        "wih1": u(ks[4], (H, 4 * H)),
        "whh1": u(ks[5], (H, 4 * H)),
        "b1":   u(ks[6], (1, 4 * H)) + u(ks[7], (1, 4 * H)),
        "wfc":  u(jax.random.fold_in(key, 100), (H, output_size)),
        "bfc":  u(jax.random.fold_in(key, 101), (1, output_size)),
    }


def reference_forward(x, params):
    """Pure-JAX reference of the same LSTM->FC forward (eval mode)."""
    B, T, I = x.shape
    H = params["whh0"].shape[0]
    h0 = jnp.zeros((B, H), jnp.float32)
    c0 = jnp.zeros((B, H), jnp.float32)
    h1 = jnp.zeros((B, H), jnp.float32)
    c1 = jnp.zeros((B, H), jnp.float32)

    def cell(x_in, h, c, wih, whh, b):
        gates = x_in @ wih + h @ whh + b
        i = jax.nn.sigmoid(gates[:, 0 * H:1 * H])
        f = jax.nn.sigmoid(gates[:, 1 * H:2 * H])
        g = jnp.tanh(gates[:, 2 * H:3 * H])
        o = jax.nn.sigmoid(gates[:, 3 * H:4 * H])
        c_new = f * c + i * g
        h_new = o * jnp.tanh(c_new)
        return h_new, c_new

    for t in range(T):
        x_t = x[:, t, :]
        h0, c0 = cell(x_t, h0, c0, params["wih0"], params["whh0"], params["b0"])
        h1, c1 = cell(h0, h1, c1, params["wih1"], params["whh1"], params["b1"])
    return h1 @ params["wfc"] + params["bfc"]


if __name__ == "__main__":
    B, T = 2, 8
    input_size, hidden_size, output_size = 16, 32, 8

    key = jax.random.PRNGKey(0)
    kx, kp = jax.random.split(key)
    x = jax.random.normal(kx, (B, T, input_size), jnp.float32)
    params = make_params(kp, input_size, hidden_size, output_size)

    out = sequential_body_motion_forward(x, params)
    out = jax.block_until_ready(out)

    ref = reference_forward(x, params)
    assert out.shape == (B, output_size)
    assert jnp.allclose(out, ref, atol=1e-4, rtol=1e-4), "mismatch vs reference"

    print("KERNEL_OK")
</pallas_src>

<mosaic_0001>
module attributes {stable_mosaic.version = 11 : i64} {
  func.func @kernel(%arg0: memref<72x16xf32, #tpu.memory_space<vmem>>, %arg1: memref<16x256xf32, #tpu.memory_space<vmem>>, %arg2: memref<1x256xf32, #tpu.memory_space<vmem>>, %arg3: memref<64x256xf32, #tpu.memory_space<vmem>>, %arg4: memref<64x8xf32, #tpu.memory_space<vmem>>, %arg5: memref<1x8xf32, #tpu.memory_space<vmem>>, %arg6: memref<8x8xf32, #tpu.memory_space<vmem>>) attributes {dimension_semantics = [], scalar_prefetch = 0 : i64, scratch_operands = 0 : i64, tpu.core_type = #tpu.core_type<tc>} {
    %c0 = arith.constant 0 : index
    %c0_0 = arith.constant 0 : index
    %0 = vector.load %arg0[%c0, %c0_0] : memref<72x16xf32, #tpu.memory_space<vmem>>, vector<72x16xf32>
    %c0_1 = arith.constant 0 : index
    %c0_2 = arith.constant 0 : index
    %1 = vector.load %arg1[%c0_1, %c0_2] : memref<16x256xf32, #tpu.memory_space<vmem>>, vector<16x256xf32>
    %cst = arith.constant dense<0.000000e+00> : vector<72x256xf32>
    %2 = tpu.matmul %0, %1, %cst {dimension_numbers = #tpu.dot_dimension_numbers<[1], [0], [0], [1], [0, 0, 1, 1], [], []>} : vector<72x16xf32>, vector<16x256xf32>, vector<72x256xf32> -> vector<72x256xf32>
    %c0_3 = arith.constant 0 : index
    %c0_4 = arith.constant 0 : index
    %3 = vector.load %arg2[%c0_3, %c0_4] : memref<1x256xf32, #tpu.memory_space<vmem>>, vector<1x256xf32>
    %4 = vector.broadcast %3 : vector<1x256xf32> to vector<72x256xf32>
    %5 = arith.addf %2, %4 : vector<72x256xf32>
    %c0_5 = arith.constant 0 : index
    %c0_6 = arith.constant 0 : index
    %6 = vector.load %arg3[%c0_5, %c0_6] : memref<64x256xf32, #tpu.memory_space<vmem>>, vector<64x256xf32>
    %7 = tpu.iota {dimensions = array<i32: 1>} : vector<8x256xi32>
    %c128_i32 = arith.constant 128 : i32
    %8 = vector.broadcast %c128_i32 : i32 to vector<8x256xi32>
    %9 = arith.cmpi sge, %7, %8 : vector<8x256xi32>
    %c192_i32 = arith.constant 192 : i32
    %10 = vector.broadcast %c192_i32 : i32 to vector<8x256xi32>
    %11 = arith.cmpi slt, %7, %10 : vector<8x256xi32>
    %12 = arith.andi %9, %11 : vector<8x256xi1>
    %13 = tpu.iota {dimensions = array<i32: 1>} : vector<8x64xi32>
    %c32_i32 = arith.constant 32 : i32
    %14 = vector.broadcast %c32_i32 : i32 to vector<8x64xi32>
    %15 = arith.cmpi slt, %13, %14 : vector<8x64xi32>
    %16 = vector.extract_strided_slice %5 {offsets = [0, 0], sizes = [8, 256], strides = [1, 1]} : vector<72x256xf32> to vector<8x256xf32>
    %cst_7 = arith.constant 0.000000e+00 : f32
    %17 = vector.broadcast %cst_7 : f32 to vector<8x64xf32>
    %cst_8 = arith.constant 5.000000e-01 : f32
    %18 = vector.broadcast %cst_8 : f32 to vector<8x256xf32>
    %19 = arith.mulf %18, %16 : vector<8x256xf32>
    %20 = arith.select %12, %16, %19 : vector<8x256xi1>, vector<8x256xf32>
    %21 = math.tanh %20 : vector<8x256xf32>
    %cst_9 = arith.constant 5.000000e-01 : f32
    %22 = vector.broadcast %cst_9 : f32 to vector<8x256xf32>
    %23 = arith.mulf %22, %21 : vector<8x256xf32>
    %cst_10 = arith.constant 5.000000e-01 : f32
    %24 = vector.broadcast %cst_10 : f32 to vector<8x256xf32>
    %25 = arith.addf %23, %24 : vector<8x256xf32>
    %26 = arith.select %12, %21, %25 : vector<8x256xi1>, vector<8x256xf32>
    %27 = vector.extract_strided_slice %26 {offsets = [0, 0], sizes = [8, 64], strides = [1, 1]} : vector<8x256xf32> to vector<8x64xf32>
    %28 = vector.extract_strided_slice %26 {offsets = [0, 64], sizes = [8, 64], strides = [1, 1]} : vector<8x256xf32> to vector<8x64xf32>
    %29 = vector.extract_strided_slice %26 {offsets = [0, 128], sizes = [8, 64], strides = [1, 1]} : vector<8x256xf32> to vector<8x64xf32>
    %30 = vector.extract_strided_slice %26 {offsets = [0, 192], sizes = [8, 64], strides = [1, 1]} : vector<8x256xf32> to vector<8x64xf32>
    %31 = arith.mulf %28, %17 : vector<8x64xf32>
    %32 = arith.mulf %27, %29 : vector<8x64xf32>
    %33 = arith.addf %31, %32 : vector<8x64xf32>
    %34 = math.tanh %33 : vector<8x64xf32>
    %35 = arith.mulf %30, %34 : vector<8x64xf32>
    %cst_11 = arith.constant 0.000000e+00 : f32
    %36 = vector.broadcast %cst_11 : f32 to vector<8x64xf32>
    %37 = arith.select %15, %35, %36 : vector<8x64xi1>, vector<8x64xf32>
    %cst_12 = arith.constant 0.000000e+00 : f32
    %38 = vector.broadcast %cst_12 : f32 to vector<8x64xf32>
    %39 = arith.select %15, %33, %38 : vector<8x64xi1>, vector<8x64xf32>
    %cst_13 = arith.constant dense<0.000000e+00> : vector<8x256xf32>
    %40 = tpu.matmul %37, %6, %cst_13 {dimension_numbers = #tpu.dot_dimension_numbers<[1], [0], [0], [1], [0, 0, 1, 1], [], []>} : vector<8x64xf32>, vector<64x256xf32>, vector<8x256xf32> -> vector<8x256xf32>
    %41 = vector.extract_strided_slice %5 {offsets = [8, 0], sizes = [8, 256], strides = [1, 1]} : vector<72x256xf32> to vector<8x256xf32>
    %42 = arith.addf %40, %41 : vector<8x256xf32>
    %cst_14 = arith.constant 5.000000e-01 : f32
    %43 = vector.broadcast %cst_14 : f32 to vector<8x256xf32>
    %44 = arith.mulf %43, %42 : vector<8x256xf32>
    %45 = arith.select %12, %42, %44 : vector<8x256xi1>, vector<8x256xf32>
    %46 = math.tanh %45 : vector<8x256xf32>
    %cst_15 = arith.constant 5.000000e-01 : f32
    %47 = vector.broadcast %cst_15 : f32 to vector<8x256xf32>
    %48 = arith.mulf %47, %46 : vector<8x256xf32>
    %cst_16 = arith.constant 5.000000e-01 : f32
    %49 = vector.broadcast %cst_16 : f32 to vector<8x256xf32>
    %50 = arith.addf %48, %49 : vector<8x256xf32>
    %51 = arith.select %12, %46, %50 : vector<8x256xi1>, vector<8x256xf32>
    %52 = vector.extract_strided_slice %51 {offsets = [0, 0], sizes = [8, 64], strides = [1, 1]} : vector<8x256xf32> to vector<8x64xf32>
    %53 = vector.extract_strided_slice %51 {offsets = [0, 64], sizes = [8, 64], strides = [1, 1]} : vector<8x256xf32> to vector<8x64xf32>
    %54 = vector.extract_strided_slice %51 {offsets = [0, 128], sizes = [8, 64], strides = [1, 1]} : vector<8x256xf32> to vector<8x64xf32>
    %55 = vector.extract_strided_slice %51 {offsets = [0, 192], sizes = [8, 64], strides = [1, 1]} : vector<8x256xf32> to vector<8x64xf32>
    %56 = arith.mulf %53, %39 : vector<8x64xf32>
    %57 = arith.mulf %52, %54 : vector<8x64xf32>
    %58 = arith.addf %56, %57 : vector<8x64xf32>
    %59 = math.tanh %58 : vector<8x64xf32>
    %60 = arith.mulf %55, %59 : vector<8x64xf32>
    %cst_17 = arith.constant dense<0.000000e+00> : vector<8x256xf32>
    %61 = tpu.matmul %60, %6, %cst_17 {dimension_numbers = #tpu.dot_dimension_numbers<[1], [0], [0], [1], [0, 0, 1, 1], [], []>} : vector<8x64xf32>, vector<64x256xf32>, vector<8x256xf32> -> vector<8x256xf32>
    %62 = vector.extract_strided_slice %5 {offsets = [16, 0], sizes = [8, 256], strides = [1, 1]} : vector<72x256xf32> to vector<8x256xf32>
    %63 = arith.addf %61, %62 : vector<8x256xf32>
    %cst_18 = arith.constant 5.000000e-01 : f32
    %64 = vector.broadcast %cst_18 : f32 to vector<8x256xf32>
    %65 = arith.mulf %64, %63 : vector<8x256xf32>
    %66 = arith.select %12, %63, %65 : vector<8x256xi1>, vector<8x256xf32>
    %67 = math.tanh %66 : vector<8x256xf32>
    %cst_19 = arith.constant 5.000000e-01 : f32
    %68 = vector.broadcast %cst_19 : f32 to vector<8x256xf32>
    %69 = arith.mulf %68, %67 : vector<8x256xf32>
    %cst_20 = arith.constant 5.000000e-01 : f32
    %70 = vector.broadcast %cst_20 : f32 to vector<8x256xf32>
    %71 = arith.addf %69, %70 : vector<8x256xf32>
    %72 = arith.select %12, %67, %71 : vector<8x256xi1>, vector<8x256xf32>
    %73 = vector.extract_strided_slice %72 {offsets = [0, 0], sizes = [8, 64], strides = [1, 1]} : vector<8x256xf32> to vector<8x64xf32>
    %74 = vector.extract_strided_slice %72 {offsets = [0, 64], sizes = [8, 64], strides = [1, 1]} : vector<8x256xf32> to vector<8x64xf32>
    %75 = vector.extract_strided_slice %72 {offsets = [0, 128], sizes = [8, 64], strides = [1, 1]} : vector<8x256xf32> to vector<8x64xf32>
    %76 = vector.extract_strided_slice %72 {offsets = [0, 192], sizes = [8, 64], strides = [1, 1]} : vector<8x256xf32> to vector<8x64xf32>
    %77 = arith.mulf %74, %58 : vector<8x64xf32>
    %78 = arith.mulf %73, %75 : vector<8x64xf32>
    %79 = arith.addf %77, %78 : vector<8x64xf32>
    %80 = math.tanh %79 : vector<8x64xf32>
    %81 = arith.mulf %76, %80 : vector<8x64xf32>
    %cst_21 = arith.constant dense<0.000000e+00> : vector<8x256xf32>
    %82 = tpu.matmul %81, %6, %cst_21 {dimension_numbers = #tpu.dot_dimension_numbers<[1], [0], [0], [1], [0, 0, 1, 1], [], []>} : vector<8x64xf32>, vector<64x256xf32>, vector<8x256xf32> -> vector<8x256xf32>
    %83 = vector.extract_strided_slice %5 {offsets = [24, 0], sizes = [8, 256], strides = [1, 1]} : vector<72x256xf32> to vector<8x256xf32>
    %84 = arith.addf %82, %83 : vector<8x256xf32>
    %cst_22 = arith.constant 5.000000e-01 : f32
    %85 = vector.broadcast %cst_22 : f32 to vector<8x256xf32>
    %86 = arith.mulf %85, %84 : vector<8x256xf32>
    %87 = arith.select %12, %84, %86 : vector<8x256xi1>, vector<8x256xf32>
    %88 = math.tanh %87 : vector<8x256xf32>
    %cst_23 = arith.constant 5.000000e-01 : f32
    %89 = vector.broadcast %cst_23 : f32 to vector<8x256xf32>
    %90 = arith.mulf %89, %88 : vector<8x256xf32>
    %cst_24 = arith.constant 5.000000e-01 : f32
    %91 = vector.broadcast %cst_24 : f32 to vector<8x256xf32>
    %92 = arith.addf %90, %91 : vector<8x256xf32>
    %93 = arith.select %12, %88, %92 : vector<8x256xi1>, vector<8x256xf32>
    %94 = vector.extract_strided_slice %93 {offsets = [0, 0], sizes = [8, 64], strides = [1, 1]} : vector<8x256xf32> to vector<8x64xf32>
    %95 = vector.extract_strided_slice %93 {offsets = [0, 64], sizes = [8, 64], strides = [1, 1]} : vector<8x256xf32> to vector<8x64xf32>
    %96 = vector.extract_strided_slice %93 {offsets = [0, 128], sizes = [8, 64], strides = [1, 1]} : vector<8x256xf32> to vector<8x64xf32>
    %97 = vector.extract_strided_slice %93 {offsets = [0, 192], sizes = [8, 64], strides = [1, 1]} : vector<8x256xf32> to vector<8x64xf32>
    %98 = arith.mulf %95, %79 : vector<8x64xf32>
    %99 = arith.mulf %94, %96 : vector<8x64xf32>
    %100 = arith.addf %98, %99 : vector<8x64xf32>
    %101 = math.tanh %100 : vector<8x64xf32>
    %102 = arith.mulf %97, %101 : vector<8x64xf32>
    %cst_25 = arith.constant dense<0.000000e+00> : vector<8x256xf32>
    %103 = tpu.matmul %102, %6, %cst_25 {dimension_numbers = #tpu.dot_dimension_numbers<[1], [0], [0], [1], [0, 0, 1, 1], [], []>} : vector<8x64xf32>, vector<64x256xf32>, vector<8x256xf32> -> vector<8x256xf32>
    %104 = vector.extract_strided_slice %5 {offsets = [32, 0], sizes = [8, 256], strides = [1, 1]} : vector<72x256xf32> to vector<8x256xf32>
    %105 = arith.addf %103, %104 : vector<8x256xf32>
    %cst_26 = arith.constant 5.000000e-01 : f32
    %106 = vector.broadcast %cst_26 : f32 to vector<8x256xf32>
    %107 = arith.mulf %106, %105 : vector<8x256xf32>
    %108 = arith.select %12, %105, %107 : vector<8x256xi1>, vector<8x256xf32>
    %109 = math.tanh %108 : vector<8x256xf32>
    %cst_27 = arith.constant 5.000000e-01 : f32
    %110 = vector.broadcast %cst_27 : f32 to vector<8x256xf32>
    %111 = arith.mulf %110, %109 : vector<8x256xf32>
    %cst_28 = arith.constant 5.000000e-01 : f32
    %112 = vector.broadcast %cst_28 : f32 to vector<8x256xf32>
    %113 = arith.addf %111, %112 : vector<8x256xf32>
    %114 = arith.select %12, %109, %113 : vector<8x256xi1>, vector<8x256xf32>
    %115 = vector.extract_strided_slice %114 {offsets = [0, 0], sizes = [8, 64], strides = [1, 1]} : vector<8x256xf32> to vector<8x64xf32>
    %116 = vector.extract_strided_slice %114 {offsets = [0, 64], sizes = [8, 64], strides = [1, 1]} : vector<8x256xf32> to vector<8x64xf32>
    %117 = vector.extract_strided_slice %114 {offsets = [0, 128], sizes = [8, 64], strides = [1, 1]} : vector<8x256xf32> to vector<8x64xf32>
    %118 = vector.extract_strided_slice %114 {offsets = [0, 192], sizes = [8, 64], strides = [1, 1]} : vector<8x256xf32> to vector<8x64xf32>
    %119 = arith.mulf %116, %100 : vector<8x64xf32>
    %120 = arith.mulf %115, %117 : vector<8x64xf32>
    %121 = arith.addf %119, %120 : vector<8x64xf32>
    %122 = math.tanh %121 : vector<8x64xf32>
    %123 = arith.mulf %118, %122 : vector<8x64xf32>
    %cst_29 = arith.constant dense<0.000000e+00> : vector<8x256xf32>
    %124 = tpu.matmul %123, %6, %cst_29 {dimension_numbers = #tpu.dot_dimension_numbers<[1], [0], [0], [1], [0, 0, 1, 1], [], []>} : vector<8x64xf32>, vector<64x256xf32>, vector<8x256xf32> -> vector<8x256xf32>
    %125 = vector.extract_strided_slice %5 {offsets = [40, 0], sizes = [8, 256], strides = [1, 1]} : vector<72x256xf32> to vector<8x256xf32>
    %126 = arith.addf %124, %125 : vector<8x256xf32>
    %cst_30 = arith.constant 5.000000e-01 : f32
    %127 = vector.broadcast %cst_30 : f32 to vector<8x256xf32>
    %128 = arith.mulf %127, %126 : vector<8x256xf32>
    %129 = arith.select %12, %126, %128 : vector<8x256xi1>, vector<8x256xf32>
    %130 = math.tanh %129 : vector<8x256xf32>
    %cst_31 = arith.constant 5.000000e-01 : f32
    %131 = vector.broadcast %cst_31 : f32 to vector<8x256xf32>
    %132 = arith.mulf %131, %130 : vector<8x256xf32>
    %cst_32 = arith.constant 5.000000e-01 : f32
    %133 = vector.broadcast %cst_32 : f32 to vector<8x256xf32>
    %134 = arith.addf %132, %133 : vector<8x256xf32>
    %135 = arith.select %12, %130, %134 : vector<8x256xi1>, vector<8x256xf32>
    %136 = vector.extract_strided_slice %135 {offsets = [0, 0], sizes = [8, 64], strides = [1, 1]} : vector<8x256xf32> to vector<8x64xf32>
    %137 = vector.extract_strided_slice %135 {offsets = [0, 64], sizes = [8, 64], strides = [1, 1]} : vector<8x256xf32> to vector<8x64xf32>
    %138 = vector.extract_strided_slice %135 {offsets = [0, 128], sizes = [8, 64], strides = [1, 1]} : vector<8x256xf32> to vector<8x64xf32>
    %139 = vector.extract_strided_slice %135 {offsets = [0, 192], sizes = [8, 64], strides = [1, 1]} : vector<8x256xf32> to vector<8x64xf32>
    %140 = arith.mulf %137, %121 : vector<8x64xf32>
    %141 = arith.mulf %136, %138 : vector<8x64xf32>
    %142 = arith.addf %140, %141 : vector<8x64xf32>
    %143 = math.tanh %142 : vector<8x64xf32>
    %144 = arith.mulf %139, %143 : vector<8x64xf32>
    %cst_33 = arith.constant dense<0.000000e+00> : vector<8x256xf32>
    %145 = tpu.matmul %144, %6, %cst_33 {dimension_numbers = #tpu.dot_dimension_numbers<[1], [0], [0], [1], [0, 0, 1, 1], [], []>} : vector<8x64xf32>, vector<64x256xf32>, vector<8x256xf32> -> vector<8x256xf32>
    %146 = vector.extract_strided_slice %5 {offsets = [48, 0], sizes = [8, 256], strides = [1, 1]} : vector<72x256xf32> to vector<8x256xf32>
    %147 = arith.addf %145, %146 : vector<8x256xf32>
    %cst_34 = arith.constant 5.000000e-01 : f32
    %148 = vector.broadcast %cst_34 : f32 to vector<8x256xf32>
    %149 = arith.mulf %148, %147 : vector<8x256xf32>
    %150 = arith.select %12, %147, %149 : vector<8x256xi1>, vector<8x256xf32>
    %151 = math.tanh %150 : vector<8x256xf32>
    %cst_35 = arith.constant 5.000000e-01 : f32
    %152 = vector.broadcast %cst_35 : f32 to vector<8x256xf32>
    %153 = arith.mulf %152, %151 : vector<8x256xf32>
    %cst_36 = arith.constant 5.000000e-01 : f32
    %154 = vector.broadcast %cst_36 : f32 to vector<8x256xf32>
    %155 = arith.addf %153, %154 : vector<8x256xf32>
    %156 = arith.select %12, %151, %155 : vector<8x256xi1>, vector<8x256xf32>
    %157 = vector.extract_strided_slice %156 {offsets = [0, 0], sizes = [8, 64], strides = [1, 1]} : vector<8x256xf32> to vector<8x64xf32>
    %158 = vector.extract_strided_slice %156 {offsets = [0, 64], sizes = [8, 64], strides = [1, 1]} : vector<8x256xf32> to vector<8x64xf32>
    %159 = vector.extract_strided_slice %156 {offsets = [0, 128], sizes = [8, 64], strides = [1, 1]} : vector<8x256xf32> to vector<8x64xf32>
    %160 = vector.extract_strided_slice %156 {offsets = [0, 192], sizes = [8, 64], strides = [1, 1]} : vector<8x256xf32> to vector<8x64xf32>
    %161 = arith.mulf %158, %142 : vector<8x64xf32>
    %162 = arith.mulf %157, %159 : vector<8x64xf32>
    %163 = arith.addf %161, %162 : vector<8x64xf32>
    %164 = math.tanh %163 : vector<8x64xf32>
    %165 = arith.mulf %160, %164 : vector<8x64xf32>
    %cst_37 = arith.constant dense<0.000000e+00> : vector<8x256xf32>
    %166 = tpu.matmul %165, %6, %cst_37 {dimension_numbers = #tpu.dot_dimension_numbers<[1], [0], [0], [1], [0, 0, 1, 1], [], []>} : vector<8x64xf32>, vector<64x256xf32>, vector<8x256xf32> -> vector<8x256xf32>
    %167 = vector.extract_strided_slice %5 {offsets = [56, 0], sizes = [8, 256], strides = [1, 1]} : vector<72x256xf32> to vector<8x256xf32>
    %168 = arith.addf %166, %167 : vector<8x256xf32>
    %cst_38 = arith.constant 5.000000e-01 : f32
    %169 = vector.broadcast %cst_38 : f32 to vector<8x256xf32>
    %170 = arith.mulf %169, %168 : vector<8x256xf32>
    %171 = arith.select %12, %168, %170 : vector<8x256xi1>, vector<8x256xf32>
    %172 = math.tanh %171 : vector<8x256xf32>
    %cst_39 = arith.constant 5.000000e-01 : f32
    %173 = vector.broadcast %cst_39 : f32 to vector<8x256xf32>
    %174 = arith.mulf %173, %172 : vector<8x256xf32>
    %cst_40 = arith.constant 5.000000e-01 : f32
    %175 = vector.broadcast %cst_40 : f32 to vector<8x256xf32>
    %176 = arith.addf %174, %175 : vector<8x256xf32>
    %177 = arith.select %12, %172, %176 : vector<8x256xi1>, vector<8x256xf32>
    %178 = vector.extract_strided_slice %177 {offsets = [0, 0], sizes = [8, 64], strides = [1, 1]} : vector<8x256xf32> to vector<8x64xf32>
    %179 = vector.extract_strided_slice %177 {offsets = [0, 64], sizes = [8, 64], strides = [1, 1]} : vector<8x256xf32> to vector<8x64xf32>
    %180 = vector.extract_strided_slice %177 {offsets = [0, 128], sizes = [8, 64], strides = [1, 1]} : vector<8x256xf32> to vector<8x64xf32>
    %181 = vector.extract_strided_slice %177 {offsets = [0, 192], sizes = [8, 64], strides = [1, 1]} : vector<8x256xf32> to vector<8x64xf32>
    %182 = arith.mulf %179, %163 : vector<8x64xf32>
    %183 = arith.mulf %178, %180 : vector<8x64xf32>
    %184 = arith.addf %182, %183 : vector<8x64xf32>
    %185 = math.tanh %184 : vector<8x64xf32>
    %186 = arith.mulf %181, %185 : vector<8x64xf32>
    %cst_41 = arith.constant dense<0.000000e+00> : vector<8x256xf32>
    %187 = tpu.matmul %186, %6, %cst_41 {dimension_numbers = #tpu.dot_dimension_numbers<[1], [0], [0], [1], [0, 0, 1, 1], [], []>} : vector<8x64xf32>, vector<64x256xf32>, vector<8x256xf32> -> vector<8x256xf32>
    %188 = vector.extract_strided_slice %5 {offsets = [64, 0], sizes = [8, 256], strides = [1, 1]} : vector<72x256xf32> to vector<8x256xf32>
    %189 = arith.addf %187, %188 : vector<8x256xf32>
    %cst_42 = arith.constant 5.000000e-01 : f32
    %190 = vector.broadcast %cst_42 : f32 to vector<8x256xf32>
    %191 = arith.mulf %190, %189 : vector<8x256xf32>
    %192 = arith.select %12, %189, %191 : vector<8x256xi1>, vector<8x256xf32>
    %193 = math.tanh %192 : vector<8x256xf32>
    %cst_43 = arith.constant 5.000000e-01 : f32
    %194 = vector.broadcast %cst_43 : f32 to vector<8x256xf32>
    %195 = arith.mulf %194, %193 : vector<8x256xf32>
    %cst_44 = arith.constant 5.000000e-01 : f32
    %196 = vector.broadcast %cst_44 : f32 to vector<8x256xf32>
    %197 = arith.addf %195, %196 : vector<8x256xf32>
    %198 = arith.select %12, %193, %197 : vector<8x256xi1>, vector<8x256xf32>
    %199 = vector.extract_strided_slice %198 {offsets = [0, 0], sizes = [8, 64], strides = [1, 1]} : vector<8x256xf32> to vector<8x64xf32>
    %200 = vector.extract_strided_slice %198 {offsets = [0, 64], sizes = [8, 64], strides = [1, 1]} : vector<8x256xf32> to vector<8x64xf32>
    %201 = vector.extract_strided_slice %198 {offsets = [0, 128], sizes = [8, 64], strides = [1, 1]} : vector<8x256xf32> to vector<8x64xf32>
    %202 = vector.extract_strided_slice %198 {offsets = [0, 192], sizes = [8, 64], strides = [1, 1]} : vector<8x256xf32> to vector<8x64xf32>
    %203 = arith.mulf %200, %184 : vector<8x64xf32>
    %204 = arith.mulf %199, %201 : vector<8x64xf32>
    %205 = arith.addf %203, %204 : vector<8x64xf32>
    %206 = math.tanh %205 : vector<8x64xf32>
    %207 = arith.mulf %202, %206 : vector<8x64xf32>
    %c0_45 = arith.constant 0 : index
    %c0_46 = arith.constant 0 : index
    %208 = vector.load %arg4[%c0_45, %c0_46] : memref<64x8xf32, #tpu.memory_space<vmem>>, vector<64x8xf32>
    %cst_47 = arith.constant dense<0.000000e+00> : vector<8x8xf32>
    %209 = tpu.matmul %207, %208, %cst_47 {dimension_numbers = #tpu.dot_dimension_numbers<[1], [0], [0], [1], [0, 0, 1, 1], [], []>} : vector<8x64xf32>, vector<64x8xf32>, vector<8x8xf32> -> vector<8x8xf32>
    %c0_48 = arith.constant 0 : index
    %c0_49 = arith.constant 0 : index
    %210 = vector.load %arg5[%c0_48, %c0_49] : memref<1x8xf32, #tpu.memory_space<vmem>>, vector<1x8xf32>
    %211 = vector.broadcast %210 : vector<1x8xf32> to vector<8x8xf32>
    %212 = arith.addf %209, %211 : vector<8x8xf32>
    %c0_50 = arith.constant 0 : index
    %c0_51 = arith.constant 0 : index
    %213 = vector.load %arg6[%c0_50, %c0_51] : memref<8x8xf32, #tpu.memory_space<vmem>>, vector<8x8xf32>
    tpu.vector_store %arg6[%c0_50, %c0_51], %212 {strides = array<i32>} : memref<8x8xf32, #tpu.memory_space<vmem>>, vector<8x8xf32>,
    return
  }
}

</mosaic_0001>

<bundles_post_ra>
// kernel: tpu_custom_call.1
= control target key start
LH: loop header
LB: loop body
LE: loop exit
PB: predicated region body
PF: predicated region fallthrough
CT: control target
= control target key end

     0   :  { %11 = vsyncpa [#allocation3], 0  ;;  %s1415_s0 = inlined_call_operand.vmem [shape: f32[72,16], index: 0, kind: input, shape index: {}]   ;;  %s1416_s1 = inlined_call_operand.hbm [shape: f32[16,256], index: 1, kind: input, shape index: {}]   ;;  %s1417_s2 = inlined_call_operand.vmem [shape: f32[1,256], index: 2, kind: input, shape index: {}]   ;;  %s1418_s3 = inlined_call_operand.vmem [shape: f32[64,256], index: 3, kind: input, shape index: {}]   ;;  %s1419_s4 = inlined_call_operand.vmem [shape: f32[64,8], index: 4, kind: input, shape index: {}]   ;;  %s1420_s5 = inlined_call_operand.vmem [shape: f32[1,8], index: 5, kind: input, shape index: {}]   ;;  %s1421_s6 = inlined_call_operand.hbm [shape: f32[8,8], index: 6, kind: output, shape index: {}]  }
   0x1   :  { %12 = vsyncpa [#allocation4], 0  ;;  %s19_s23 = sshll.u32 %s1416_s1, 4  ;;  %s968_s24 = smov [#allocation2]   ;;  %s20_s23 = int_to_ptr.hbm [resolvable:$true] %s19_s23 }
   0x2   :  { %s21_s25 = sshll.u32 %s968_s24, 4  ;;  %s969_s26 = smov 256   ;;  %s22_s25 = int_to_ptr.vmem [resolvable:$true] %s21_s25 }
   0x3   :  { %s970_s27 = smov 16  }
   0x4   :  { %27 = dma.hbm_to_vmem [thread:$0]  %s20_s23, 512, %s22_s25, [#allocation3], %s969_s26, %s969_s26, %s970_s27  }
   0x5   :  { %964 = dma.done.wait [#allocation3], 512  }
   0x6   :  { %965 = vsyncadd [#allocation3], 4294966784  ;;  %v51_v0 = vld [vmem:[#allocation2 + $0x10] sm:$0xff]  ;;  %v49_v1 = vld [vmem:[#allocation2] sm:$0xff]  ;;  %vm59_vm0 = vcmask 130048   ;;  %v191_v7 = vlaneseq  ;;  %vm232_vm3 = vcmask 523264  }
   0x7   :  { %854 = vmatpush.msra.mxu1 %v51_v0  ;;  %v1014_v2 = vld [vmem:[%s1415_s0 + $0x40] sm:$0xff]  ;;  %101 = vmatpush.msra.mxu0 %v51_v0  ;;  %v52_v3 = vld [vmem:[#allocation2 + $0x18] sm:$0xff]  ;;  %v50_v5 = vld [vmem:[#allocation2 + $0x8] sm:$0xff]  ;;  %s972_s20 = smov [#allocation5]   ;;  %s809_s23 = sshll.u32 %s1421_s6, 4  ;;  %vm800_vm4 = vcmask 64512   ;;  %s810_s23 = int_to_ptr.hbm [resolvable:$true] %s809_s23 }
   0x8   :  { %v40_v4 = vld [vmem:[%s1415_s0] sm:$0xff]  ;;  %v1031_v12 = vand.u32 127, %v191_v7  ;;  %v1048_v28 = vld [vmem:[%s1418_s3 + $0x70] sm:$0xff]  ;;  %v1053_v29 = vld [vmem:[%s1418_s3 + $0x78] sm:$0xff]  ;;  %s807_s21 = sshll.u32 %s972_s20, 4  ;;  %s808_s21 = int_to_ptr.vmem [resolvable:$true] %s807_s21 }
   0x9   :  { %855 = vmatpush.msra.mxu1 %v49_v1  ;;  %102 = vmatpush.msra.mxu0 %v49_v1  ;;  %v53_v6 = vld [vmem:[%s1417_s2] sm:$0x3]  ;;  %s971_s2 = smov 64   ;;  %v1065_v31 = vld [vmem:[%s1418_s3 + $0x68] sm:$0xff]  ;;  %v1070_v32 = vld [vmem:[%s1418_s3 + $0x50] sm:$0xff] }
   0xa   :  { %827 = vmatmul.msk.f32.vlgmr.msra.gmra.mxu1 %vm59_vm0, %v1014_v2  ;;  %819 = vmatmul.msk.f32.vlgmr.msra.gmra.mxu0 %vm59_vm0, %v40_v4  ;;  %v1026_v8 = vperm.slane %v53_v6, 0  ;;  %v1033_v13 = vperm.slane %v53_v6, 1  ;;  %v1036_v15 = vadd.s32 128, %v1031_v12  ;;  %v1058_v30 = vld [vmem:[%s1418_s3 + $0x60] sm:$0xff]  ;;  %v1075_v33 = vld [vmem:[%s1418_s3 + $0x58] sm:$0xff]  ;;  %v1097_v40 = vld [vmem:[%s1418_s3 + $0x48] sm:$0xff] }
   0xb   :  { %145 = vmatpush.msrb.mxu1 %v52_v3  ;;  %244 = vmatpush.msra.mxu2 %v1048_v28  ;;  %v1092_v39 = vld [vmem:[%s1418_s3 + $0x40] sm:$0xff]  ;;  %v1104_v41 = vld [vmem:[%s1418_s3 + $0x30] sm:$0xff]  ;;  %v1109_v42 = vld [vmem:[%s1418_s3 + $0x38] sm:$0xff]  ;;  %vm200_vm2 = vcmp.lt.s32.totalorder %v1031_v12, 32 }
   0xc   :  { %vm197_vm1 = vcmp.lt.s32.totalorder %v1036_v15, 192  ;;  %264 = vmatpush.msra.mxu3 %v1053_v29  ;;  %512 = vmatpush.msrb.mxu0 %v1048_v28  ;;  %v1114_v43 = vld [vmem:[%s1418_s3 + $0x20] sm:$0xff]  ;;  %v1119_v44 = vld [vmem:[%s1418_s3 + $0x28] sm:$0xff]  ;;  %v1128_v45 = vld [vmem:[%s1418_s3 + $0x10] sm:$0xff] }
   0xd   :  { %146 = vmatpush.msrb.mxu1 %v50_v5  ;;  %245 = vmatpush.msra.mxu2 %v1058_v30  ;;  %v1133_v46 = vld [vmem:[%s1418_s3 + $0x18] sm:$0xff]  ;;  %v1146_v47 = vld [vmem:[%s1418_s3] sm:$0xff]  ;;  %v1151_v48 = vld [vmem:[%s1418_s3 + $0x8] sm:$0xff] }
   0xe   :  { %265 = vmatpush.msra.mxu3 %v1065_v31  ;;  %513 = vmatpush.msrb.mxu0 %v1058_v30  ;;  %v41_v49 = vld [vmem:[%s1415_s0 + $0x8] sm:$0xff]  ;;  %v767_v15 = vld [vmem:[%s1419_s4 + $0x20] sm:$0xff] }
   0xf   :  { %532 = vmatpush.msra.mxu1 %v1053_v29  ;;  %246 = vmatpush.msra.mxu2 %v1070_v32 }
  0x10   :  { %266 = vmatpush.msra.mxu3 %v1075_v33  ;;  %514 = vmatpush.msrb.mxu0 %v1070_v32 }
  0x11   :  { %533 = vmatpush.msra.mxu1 %v1065_v31  ;;  %247 = vmatpush.msra.mxu2 %v1092_v39 }
  0x12   :  { %828 = vmatmul.msk.f32.vlgmr.msrb.gmra.mxu1 %vm59_vm0, %v40_v4  ;;  %267 = vmatpush.msra.mxu3 %v1097_v40 }
  0x13   :  { %534 = vmatpush.msra.mxu1 %v1075_v33  ;;  %515 = vmatpush.msrb.mxu0 %v1092_v39 }
  0x14   :  { %248 = vmatpush.msra.mxu2 %v1104_v41  ;;  %268 = vmatpush.msra.mxu3 %v1109_v42 }
  0x15   :  { %535 = vmatpush.msra.mxu1 %v1097_v40  ;;  %516 = vmatpush.msrb.mxu0 %v1104_v41 }
  0x16   :  { %249 = vmatpush.msra.mxu2 %v1114_v43  ;;  %269 = vmatpush.msra.mxu3 %v1119_v44 }
  0x17   :  { %536 = vmatpush.msra.mxu1 %v1109_v42  ;;  %517 = vmatpush.msrb.mxu0 %v1114_v43 }
  0x18   :  { %250 = vmatpush.msra.mxu2 %v1128_v45  ;;  %270 = vmatpush.msra.mxu3 %v1133_v46 }
  0x19   :  { %537 = vmatpush.msra.mxu1 %v1119_v44  ;;  %518 = vmatpush.msrb.mxu0 %v1128_v45 }
  0x1a   :  { %251 = vmatpush.msra.mxu2 %v1146_v47  ;;  %271 = vmatpush.msra.mxu3 %v1151_v48 }
  0x1b   :  { %538 = vmatpush.msra.mxu1 %v1133_v46  ;;  %820 = vmatmul.msk.f32.gmra.mxu0 %vm59_vm0, %v41_v49 }
  0x1c   :  { %314 = vmatpush.msrb.mxu2 %v1048_v28  ;;  %334 = vmatpush.msrb.mxu3 %v1053_v29 }
  0x1d   :  { %829 = vmatmul.msk.f32.gmra.mxu1 %vm59_vm0, %v41_v49  ;;  %519 = vmatpush.msrb.mxu0 %v1146_v47 }
  0x1e   :  { %315 = vmatpush.msrb.mxu2 %v1058_v30  ;;  %335 = vmatpush.msrb.mxu3 %v1065_v31 }
  0x1f   :  { %539 = vmatpush.msra.mxu1 %v1151_v48  ;;  %644 = vmatpush.msra.mxu0 %v1048_v28 }
  0x20   :  { %316 = vmatpush.msrb.mxu2 %v1070_v32  ;;  %336 = vmatpush.msrb.mxu3 %v1075_v33 }
  0x21   :  { %664 = vmatpush.msrb.mxu1 %v1053_v29  ;;  %645 = vmatpush.msra.mxu0 %v1058_v30 }
  0x22   :  { %317 = vmatpush.msrb.mxu2 %v1092_v39  ;;  %337 = vmatpush.msrb.mxu3 %v1097_v40 }
  0x23   :  { %665 = vmatpush.msrb.mxu1 %v1065_v31  ;;  %646 = vmatpush.msra.mxu0 %v1070_v32 }
  0x24   :  { %318 = vmatpush.msrb.mxu2 %v1104_v41  ;;  %338 = vmatpush.msrb.mxu3 %v1109_v42 }
  0x25   :  { %666 = vmatpush.msrb.mxu1 %v1075_v33  ;;  %647 = vmatpush.msra.mxu0 %v1092_v39 }
  0x26   :  { %319 = vmatpush.msrb.mxu2 %v1114_v43  ;;  %339 = vmatpush.msrb.mxu3 %v1119_v44 }
  0x27   :  { %667 = vmatpush.msrb.mxu1 %v1097_v40  ;;  %648 = vmatpush.msra.mxu0 %v1104_v41 }
  0x28   :  { %320 = vmatpush.msrb.mxu2 %v1128_v45  ;;  %340 = vmatpush.msrb.mxu3 %v1133_v46 }
  0x29   :  { %668 = vmatpush.msrb.mxu1 %v1109_v42  ;;  %649 = vmatpush.msra.mxu0 %v1114_v43 }
  0x2a   :  { %321 = vmatpush.msrb.mxu2 %v1146_v47  ;;  %341 = vmatpush.msrb.mxu3 %v1151_v48 }
  0x2b   :  { %669 = vmatpush.msrb.mxu1 %v1119_v44  ;;  %650 = vmatpush.msra.mxu0 %v1128_v45 }
  0x2d   :  { %670 = vmatpush.msrb.mxu1 %v1133_v46  ;;  %651 = vmatpush.msra.mxu0 %v1146_v47 }
  0x2f   :  { %671 = vmatpush.msrb.mxu1 %v1151_v48 }
  0x87   :  { %v1028_v9 = vpop.f32.mrf.mxu1  ;;  %v104_v10 = vpop.f32.mrf.mxu0 }
  0x88   :  { %v105_v11 = vadd.f32 %v104_v10, %v1026_v8 }
  0x8a   :  { %v201_v14 = vmul.f32 0.5, %v105_v11 }
  0x8c   :  { %862 = vtanh.f32 %v201_v14 }
  0x8f   :  { %v148_v16 = vpop.f32.mrf.mxu1 }
  0x90   :  { %v149_v17 = vadd.f32 %v148_v16, %v1033_v13 }
  0x92   :  { %v202_v18 = vmul.f32 0.5, %v149_v17  ;;  %v863_v20 = vpop.eup %862 }
  0x93   :  { %v207_v21 = vmul.f32 0.5, %v863_v20  ;;  %v42_v20 = vld [vmem:[%s1415_s0 + $0x10] sm:$0xff] }
  0x94   :  { %v204_v19 = vsel %vm197_vm1, %v149_v17, %v202_v18  ;;  %821 = vmatmul.msk.f32.gmra.mxu0 %vm59_vm0, %v42_v20  ;;  %830 = vmatmul.msk.f32.gmra.mxu1 %vm59_vm0, %v42_v20 }
  0x95   :  { %864 = vtanh.f32 %v204_v19  ;;  %v209_v24 = vadd.f32 0.5, %v207_v21 }
  0x97   :  { %v213_v34 = vmul.f32 0.0, %v209_v24 }
  0x98   :  { %v107_v54 = vpop.f32.mrf.mxu0 }
  0x99   :  { %v108_v56 = vadd.f32 %v107_v54, %v1026_v8 }
  0x9a   :  { %v151_v55 = vpop.f32.mrf.mxu1 }
  0x9b   :  { %v865_v22 = vpop.eup %864  ;;  %v152_v57 = vadd.f32 %v151_v55, %v1033_v13 }
  0x9c   :  { %v208_v23 = vmul.f32 0.5, %v865_v22 }
  0x9e   :  { %v210_v25 = vadd.f32 0.5, %v208_v23 }
  0xa0   :  { %v212_v26 = vsel %vm197_vm1, %v865_v22, %v210_v25 }
  0xa1   :  { %v214_v27 = vmul.f32 %v212_v26, %v209_v24 }
  0xa3   :  { %216 = vrot.lane.b32.xlu0 %v214_v27, %s971_s2 }
 0x111   :  { %v110_v22 = vpop.f32.mrf.mxu0  ;;  %v154_v23 = vpop.f32.mrf.mxu1 }
 0x112   :  { %v111_v24 = vadd.f32 %v110_v22, %v1026_v8  ;;  %v155_v25 = vadd.f32 %v154_v23, %v1033_v13 }
 0x115   :  { %v217_v35 = vpop.permute.xlu0 %216 }
 0x116   :  { %v219_v36 = vadd.f32 %v217_v35, %v213_v34 }
 0x118   :  { %866 = vtanh.f32 %v219_v36  ;;  %228 = vrot.lane.b32.xlu1 %v219_v36, %s971_s2 }
 0x11e   :  { %v867_v37 = vpop.eup %866 }
 0x11f   :  { %v221_v38 = vmul.f32 %v867_v37, %v212_v26 }
 0x121   :  { %223 = vrot.lane.b32.xlu0 %v221_v38, %s971_s2 }
 0x18a   :  { %v229_v50 = vpop.permute.xlu1 %228 }
 0x18b   :  { %v231_v51 = vsel %vm200_vm2, %v229_v50, 0.0 }
 0x18c   :  { %289 = vrot.lane.b32.xlu1 %v231_v51, %s971_s2 }
 0x193   :  { %v224_v52 = vpop.permute.xlu0 %223 }
 0x194   :  { %v226_v53 = vsel %vm200_vm2, %v224_v52, 0.0 }
 0x195   :  { %837 = vmatmul.msk.f32.vlgmr.msra.gmra.mxu2 %vm232_vm3, %v226_v53  ;;  %838 = vmatmul.msk.f32.vlgmr.msra.gmra.mxu3 %vm232_vm3, %v226_v53 }
 0x196   :  { %380 = vmatpush.msra.mxu2 %v1048_v28  ;;  %400 = vmatpush.msra.mxu3 %v1053_v29 }
 0x198   :  { %381 = vmatpush.msra.mxu2 %v1058_v30  ;;  %401 = vmatpush.msra.mxu3 %v1065_v31 }
 0x19a   :  { %382 = vmatpush.msra.mxu2 %v1070_v32  ;;  %402 = vmatpush.msra.mxu3 %v1075_v33 }
 0x19c   :  { %383 = vmatpush.msra.mxu2 %v1092_v39  ;;  %403 = vmatpush.msra.mxu3 %v1097_v40 }
 0x19e   :  { %384 = vmatpush.msra.mxu2 %v1104_v41  ;;  %404 = vmatpush.msra.mxu3 %v1109_v42 }
 0x1a0   :  { %385 = vmatpush.msra.mxu2 %v1114_v43  ;;  %405 = vmatpush.msra.mxu3 %v1119_v44 }
 0x1a2   :  { %386 = vmatpush.msra.mxu2 %v1128_v45  ;;  %406 = vmatpush.msra.mxu3 %v1133_v46 }
 0x1a4   :  { %387 = vmatpush.msra.mxu2 %v1146_v47  ;;  %407 = vmatpush.msra.mxu3 %v1151_v48 }
 0x1fe   :  { %v290_v12 = vpop.permute.xlu1 %289 }
 0x218   :  { %v253_v58 = vpop.f32.mrf.mxu2  ;;  %v273_v59 = vpop.f32.mrf.mxu3 }
 0x219   :  { %v254_v60 = vadd.f32 %v253_v58, %v108_v56  ;;  %v274_v61 = vadd.f32 %v273_v59, %v152_v57 }
 0x21b   :  { %v276_v62 = vmul.f32 0.5, %v254_v60  ;;  %v277_v63 = vmul.f32 0.5, %v274_v61 }
 0x21d   :  { %868 = vtanh.f32 %v276_v62  ;;  %v279_v0 = vsel %vm197_vm1, %v274_v61, %v277_v63  ;;  %v43_v62 = vld [vmem:[%s1415_s0 + $0x18] sm:$0xff] }
 0x21e   :  { %870 = vtanh.f32 %v279_v0  ;;  %822 = vmatmul.msk.f32.gmra.mxu0 %vm59_vm0, %v43_v62  ;;  %831 = vmatmul.msk.f32.gmra.mxu1 %vm59_vm0, %v43_v62 }
 0x223   :  { %v869_v1 = vpop.eup %868 }
 0x224   :  { %v871_v3 = vpop.eup %870  ;;  %v282_v4 = vmul.f32 0.5, %v869_v1 }
 0x225   :  { %v283_v5 = vmul.f32 0.5, %v871_v3 }
 0x226   :  { %v284_v7 = vadd.f32 0.5, %v282_v4 }
 0x227   :  { %v285_v6 = vadd.f32 0.5, %v283_v5 }
 0x228   :  { %v292_v14 = vmul.f32 %v290_v12, %v284_v7 }
 0x229   :  { %v287_v10 = vsel %vm197_vm1, %v871_v3, %v285_v6 }
 0x22a   :  { %v293_v11 = vmul.f32 %v287_v10, %v284_v7 }
 0x22c   :  { %295 = vrot.lane.b32.xlu2 %v293_v11, %s971_s2 }
 0x286   :  { %v296_v16 = vpop.permute.xlu2 %295 }
 0x287   :  { %v298_v17 = vadd.f32 %v296_v16, %v292_v14 }
 0x289   :  { %872 = vtanh.f32 %v298_v17 }
 0x28f   :  { %v873_v18 = vpop.eup %872 }
 0x290   :  { %v300_v19 = vmul.f32 %v873_v18, %v287_v10 }
 0x292   :  { %302 = vrot.lane.b32.xlu2 %v300_v19, %s971_s2 }
 0x29b   :  { %v113_v0 = vpop.f32.mrf.mxu0  ;;  %v157_v1 = vpop.f32.mrf.mxu1 }
 0x29c   :  { %v114_v3 = vadd.f32 %v113_v0, %v1026_v8  ;;  %v158_v4 = vadd.f32 %v157_v1, %v1033_v13 }
 0x2ec   :  { %v303_v21 = vpop.permute.xlu2 %302 }
 0x2ed   :  { %839 = vmatmul.msk.f32.vlgmr.msrb.gmra.mxu2 %vm232_vm3, %v303_v21  ;;  %840 = vmatmul.msk.f32.vlgmr.msrb.gmra.mxu3 %vm232_vm3, %v303_v21 }
 0x2ee   :  { %446 = vmatpush.msrb.mxu2 %v1048_v28  ;;  %466 = vmatpush.msrb.mxu3 %v1053_v29 }
 0x2f0   :  { %447 = vmatpush.msrb.mxu2 %v1058_v30  ;;  %467 = vmatpush.msrb.mxu3 %v1065_v31 }
 0x2f2   :  { %448 = vmatpush.msrb.mxu2 %v1070_v32  ;;  %468 = vmatpush.msrb.mxu3 %v1075_v33 }
 0x2f4   :  { %449 = vmatpush.msrb.mxu2 %v1092_v39  ;;  %469 = vmatpush.msrb.mxu3 %v1097_v40 }
 0x2f6   :  { %450 = vmatpush.msrb.mxu2 %v1104_v41  ;;  %470 = vmatpush.msrb.mxu3 %v1109_v42 }
 0x2f8   :  { %451 = vmatpush.msrb.mxu2 %v1114_v43  ;;  %471 = vmatpush.msrb.mxu3 %v1119_v44 }
 0x2fa   :  { %452 = vmatpush.msrb.mxu2 %v1128_v45  ;;  %472 = vmatpush.msrb.mxu3 %v1133_v46 }
 0x2fc   :  { %453 = vmatpush.msrb.mxu2 %v1146_v47  ;;  %473 = vmatpush.msrb.mxu3 %v1151_v48 }
 0x370   :  { %v323_v26 = vpop.f32.mrf.mxu2  ;;  %v343_v27 = vpop.f32.mrf.mxu3 }
 0x371   :  { %v324_v34 = vadd.f32 %v323_v26, %v111_v24  ;;  %v344_v35 = vadd.f32 %v343_v27, %v155_v25 }
 0x373   :  { %v346_v36 = vmul.f32 0.5, %v324_v34  ;;  %v347_v37 = vmul.f32 0.5, %v344_v35 }
 0x375   :  { %874 = vtanh.f32 %v346_v36  ;;  %v349_v38 = vsel %vm197_vm1, %v344_v35, %v347_v37  ;;  %v44_v35 = vld [vmem:[%s1415_s0 + $0x20] sm:$0xff] }
 0x376   :  { %876 = vtanh.f32 %v349_v38  ;;  %823 = vmatmul.msk.f32.gmra.mxu0 %vm59_vm0, %v44_v35  ;;  %832 = vmatmul.msk.f32.gmra.mxu1 %vm59_vm0, %v44_v35 }
 0x37b   :  { %v875_v49 = vpop.eup %874 }
 0x37c   :  { %v877_v50 = vpop.eup %876  ;;  %v352_v51 = vmul.f32 0.5, %v875_v49 }
 0x37d   :  { %v353_v52 = vmul.f32 0.5, %v877_v50 }
 0x37e   :  { %v354_v54 = vadd.f32 0.5, %v352_v51  ;;  %v46_v51 = vld [vmem:[%s1415_s0 + $0x30] sm:$0xff] }
 0x37f   :  { %v355_v53 = vadd.f32 0.5, %v353_v52  ;;  %v47_v52 = vld [vmem:[%s1415_s0 + $0x38] sm:$0xff] }
 0x380   :  { %v358_v57 = vmul.f32 %v354_v54, %v298_v17 }
 0x381   :  { %v357_v55 = vsel %vm197_vm1, %v877_v50, %v355_v53  ;;  %v45_v50 = vld [vmem:[%s1415_s0 + $0x28] sm:$0xff] }
 0x382   :  { %v359_v56 = vmul.f32 %v357_v55, %v354_v54  ;;  %833 = vmatmul.msk.f32.gmra.mxu1 %vm59_vm0, %v45_v50  ;;  %824 = vmatmul.msk.f32.gmra.mxu0 %vm59_vm0, %v45_v50 }
 0x384   :  { %361 = vrot.lane.b32.xlu0 %v359_v56, %s971_s2 }
 0x38a   :  { %834 = vmatmul.msk.f32.gmra.mxu1 %vm59_vm0, %v46_v51  ;;  %825 = vmatmul.msk.f32.gmra.mxu0 %vm59_vm0, %v46_v51 }
 0x392   :  { %835 = vmatmul.msk.f32.gmra.mxu1 %vm59_vm0, %v47_v52  ;;  %826 = vmatmul.msk.f32.gmra.mxu0 %vm59_vm0, %v47_v52 }
 0x39a   :  { %836 = vmatmul.msk.f32.gmra.mxu1 %vm59_vm0, %v1014_v2 }
 0x3f6   :  { %v362_v58 = vpop.permute.xlu0 %361 }
 0x3f7   :  { %v364_v59 = vadd.f32 %v362_v58, %v358_v57 }
 0x3f9   :  { %878 = vtanh.f32 %v364_v59 }
 0x3ff   :  { %v879_v60 = vpop.eup %878 }
 0x400   :  { %v366_v61 = vmul.f32 %v879_v60, %v357_v55 }
 0x402   :  { %368 = vrot.lane.b32.xlu1 %v366_v61, %s971_s2 }
 0x474   :  { %v369_v63 = vpop.permute.xlu1 %368 }
 0x475   :  { %841 = vmatmul.msk.f32.vlgmr.msra.gmra.mxu2 %vm232_vm3, %v369_v63  ;;  %842 = vmatmul.msk.f32.vlgmr.msra.gmra.mxu3 %vm232_vm3, %v369_v63 }
 0x476   :  { %578 = vmatpush.msra.mxu2 %v1048_v28  ;;  %598 = vmatpush.msra.mxu3 %v1053_v29 }
 0x478   :  { %579 = vmatpush.msra.mxu2 %v1058_v30  ;;  %599 = vmatpush.msra.mxu3 %v1065_v31 }
 0x47a   :  { %580 = vmatpush.msra.mxu2 %v1070_v32  ;;  %600 = vmatpush.msra.mxu3 %v1075_v33 }
 0x47c   :  { %581 = vmatpush.msra.mxu2 %v1092_v39  ;;  %601 = vmatpush.msra.mxu3 %v1097_v40 }
 0x47e   :  { %582 = vmatpush.msra.mxu2 %v1104_v41  ;;  %602 = vmatpush.msra.mxu3 %v1109_v42 }
 0x480   :  { %583 = vmatpush.msra.mxu2 %v1114_v43  ;;  %603 = vmatpush.msra.mxu3 %v1119_v44 }
 0x482   :  { %584 = vmatpush.msra.mxu2 %v1128_v45  ;;  %604 = vmatpush.msra.mxu3 %v1133_v46 }
 0x484   :  { %585 = vmatpush.msra.mxu2 %v1146_v47  ;;  %605 = vmatpush.msra.mxu3 %v1151_v48 }
 0x4f8   :  { %v389_v5 = vpop.f32.mrf.mxu2  ;;  %v409_v6 = vpop.f32.mrf.mxu3 }
 0x4f9   :  { %v390_v7 = vadd.f32 %v389_v5, %v114_v3  ;;  %v410_v10 = vadd.f32 %v409_v6, %v158_v4 }
 0x4fb   :  { %v412_v11 = vmul.f32 0.5, %v390_v7  ;;  %v413_v12 = vmul.f32 0.5, %v410_v10 }
 0x4fd   :  { %880 = vtanh.f32 %v412_v11  ;;  %v415_v14 = vsel %vm197_vm1, %v410_v10, %v413_v12 }
 0x4fe   :  { %882 = vtanh.f32 %v415_v14 }
 0x503   :  { %v881_v16 = vpop.eup %880 }
 0x504   :  { %v883_v17 = vpop.eup %882  ;;  %v418_v18 = vmul.f32 0.5, %v881_v16 }
 0x505   :  { %v419_v19 = vmul.f32 0.5, %v883_v17 }
 0x506   :  { %v420_v21 = vadd.f32 0.5, %v418_v18 }
 0x507   :  { %v421_v20 = vadd.f32 0.5, %v419_v19 }
 0x508   :  { %v424_v24 = vmul.f32 %v420_v21, %v364_v59 }
 0x509   :  { %v423_v22 = vsel %vm197_vm1, %v883_v17, %v421_v20 }
 0x50a   :  { %v425_v23 = vmul.f32 %v423_v22, %v420_v21 }
 0x50c   :  { %427 = vrot.lane.b32.xlu2 %v425_v23, %s971_s2 }
 0x566   :  { %v428_v25 = vpop.permute.xlu2 %427 }
 0x567   :  { %v430_v26 = vadd.f32 %v428_v25, %v424_v24 }
 0x569   :  { %884 = vtanh.f32 %v430_v26 }
 0x56f   :  { %v885_v27 = vpop.eup %884 }
 0x570   :  { %v432_v34 = vmul.f32 %v885_v27, %v423_v22 }
 0x572   :  { %434 = vrot.lane.b32.xlu0 %v432_v34, %s971_s2 }
 0x5e4   :  { %v435_v36 = vpop.permute.xlu0 %434 }
 0x5e5   :  { %843 = vmatmul.msk.f32.vlgmr.msrb.gmra.mxu2 %vm232_vm3, %v435_v36  ;;  %844 = vmatmul.msk.f32.vlgmr.msrb.gmra.mxu3 %vm232_vm3, %v435_v36 }
 0x5e6   :  { %710 = vmatpush.msrb.mxu2 %v1048_v28  ;;  %730 = vmatpush.msrb.mxu3 %v1053_v29  ;;  %v116_v28 = vpop.f32.mrf.mxu0  ;;  %v160_v29 = vpop.f32.mrf.mxu1 }
 0x5e8   :  { %711 = vmatpush.msrb.mxu2 %v1058_v30  ;;  %731 = vmatpush.msrb.mxu3 %v1065_v31  ;;  %v117_v30 = vadd.f32 %v116_v28, %v1026_v8  ;;  %v161_v31 = vadd.f32 %v160_v29, %v1033_v13 }
 0x5ea   :  { %712 = vmatpush.msrb.mxu2 %v1070_v32  ;;  %732 = vmatpush.msrb.mxu3 %v1075_v33 }
 0x5ec   :  { %713 = vmatpush.msrb.mxu2 %v1092_v39  ;;  %733 = vmatpush.msrb.mxu3 %v1097_v40 }
 0x5ee   :  { %714 = vmatpush.msrb.mxu2 %v1104_v41  ;;  %734 = vmatpush.msrb.mxu3 %v1109_v42  ;;  %v163_v59 = vpop.f32.mrf.mxu1  ;;  %v119_v60 = vpop.f32.mrf.mxu0 }
 0x5ef   :  { %v164_v2 = vadd.f32 %v163_v59, %v1033_v13  ;;  %v120_v3 = vadd.f32 %v119_v60, %v1026_v8 }
 0x5f0   :  { %715 = vmatpush.msrb.mxu2 %v1114_v43  ;;  %735 = vmatpush.msrb.mxu3 %v1119_v44 }
 0x5f2   :  { %716 = vmatpush.msrb.mxu2 %v1128_v45  ;;  %736 = vmatpush.msrb.mxu3 %v1133_v46 }
 0x5f4   :  { %717 = vmatpush.msrb.mxu2 %v1146_v47  ;;  %737 = vmatpush.msrb.mxu3 %v1151_v48 }
 0x5f6   :  { %v166_v61 = vpop.f32.mrf.mxu1  ;;  %v122_v62 = vpop.f32.mrf.mxu0 }
 0x5f7   :  { %v167_v35 = vadd.f32 %v166_v61, %v1033_v13  ;;  %v123_v36 = vadd.f32 %v122_v62, %v1026_v8 }
 0x5fe   :  { %v1336_v63 = vpop.f32.mrf.mxu1  ;;  %v1338_v0 = vpop.f32.mrf.mxu0 }
 0x5ff   :  { %v170_v52 = vadd.f32 %v1336_v63, %v1033_v13 }
 0x606   :  { %v1340_v1 = vpop.f32.mrf.mxu1 }
 0x668   :  { %v455_v32 = vpop.f32.mrf.mxu2  ;;  %v475_v33 = vpop.f32.mrf.mxu3 }
 0x669   :  { %v456_v39 = vadd.f32 %v455_v32, %v117_v30  ;;  %v476_v40 = vadd.f32 %v475_v33, %v161_v31 }
 0x66b   :  { %v478_v41 = vmul.f32 0.5, %v456_v39  ;;  %v479_v42 = vmul.f32 0.5, %v476_v40 }
 0x66d   :  { %886 = vtanh.f32 %v478_v41  ;;  %v481_v43 = vsel %vm197_vm1, %v476_v40, %v479_v42 }
 0x66e   :  { %888 = vtanh.f32 %v481_v43 }
 0x673   :  { %v887_v44 = vpop.eup %886 }
 0x674   :  { %v889_v45 = vpop.eup %888  ;;  %v484_v46 = vmul.f32 0.5, %v887_v44 }
 0x675   :  { %v485_v47 = vmul.f32 0.5, %v889_v45 }
 0x676   :  { %v486_v37 = vadd.f32 0.5, %v484_v46 }
 0x677   :  { %v487_v48 = vadd.f32 0.5, %v485_v47 }
 0x678   :  { %v490_v53 = vmul.f32 %v486_v37, %v430_v26 }
 0x679   :  { %v489_v38 = vsel %vm197_vm1, %v889_v45, %v487_v48 }
 0x67a   :  { %v491_v49 = vmul.f32 %v489_v38, %v486_v37 }
 0x67c   :  { %493 = vrot.lane.b32.xlu1 %v491_v49, %s971_s2 }
 0x6ee   :  { %v494_v54 = vpop.permute.xlu1 %493 }
 0x6ef   :  { %v496_v55 = vadd.f32 %v494_v54, %v490_v53  ;;  %v126_v53 = vadd.f32 %v1338_v0, %v1026_v8 }
 0x6f1   :  { %890 = vtanh.f32 %v496_v55 }
 0x6f7   :  { %v891_v56 = vpop.eup %890 }
 0x6f8   :  { %v498_v57 = vmul.f32 %v891_v56, %v489_v38 }
 0x6fa   :  { %500 = vrot.lane.b32.xlu2 %v498_v57, %s971_s2 }
 0x754   :  { %v501_v58 = vpop.permute.xlu2 %500 }
 0x755   :  { %845 = vmatmul.msk.f32.vlgmr.msrb.gmra.mxu0 %vm232_vm3, %v501_v58  ;;  %846 = vmatmul.msk.f32.vlgmr.msra.gmra.mxu1 %vm232_vm3, %v501_v58 }
 0x7d2   :  { %v521_v4 = vpop.f32.mrf.mxu0  ;;  %v541_v5 = vpop.f32.mrf.mxu1 }
 0x7d3   :  { %v522_v6 = vadd.f32 %v521_v4, %v120_v3  ;;  %v542_v7 = vadd.f32 %v541_v5, %v164_v2 }
 0x7d5   :  { %v544_v10 = vmul.f32 0.5, %v522_v6  ;;  %v545_v11 = vmul.f32 0.5, %v542_v7 }
 0x7d7   :  { %892 = vtanh.f32 %v544_v10  ;;  %v547_v12 = vsel %vm197_vm1, %v542_v7, %v545_v11 }
 0x7d8   :  { %894 = vtanh.f32 %v547_v12 }
 0x7dd   :  { %v893_v14 = vpop.eup %892 }
 0x7de   :  { %v895_v16 = vpop.eup %894  ;;  %v550_v17 = vmul.f32 0.5, %v893_v14 }
 0x7df   :  { %v551_v18 = vmul.f32 0.5, %v895_v16 }
 0x7e0   :  { %v552_v20 = vadd.f32 0.5, %v550_v17  ;;  %v173_v17 = vadd.f32 %v1340_v1, %v1033_v13  ;;  %v770_v1 = vld [vmem:[%s1419_s4 + $0x38] sm:$0xff] }
 0x7e1   :  { %v553_v19 = vadd.f32 0.5, %v551_v18  ;;  %788 = vmatpush.msrb.mxu0 %v770_v1 }
 0x7e2   :  { %v556_v23 = vmul.f32 %v552_v20, %v496_v55 }
 0x7e3   :  { %v555_v21 = vsel %vm197_vm1, %v895_v16, %v553_v19  ;;  %v129_v16 = vadd.f32 %v1028_v9, %v1026_v8 }
 0x7e4   :  { %v557_v22 = vmul.f32 %v555_v21, %v552_v20 }
 0x7e6   :  { %559 = vrot.lane.b32.xlu0 %v557_v22, %s971_s2 }
 0x858   :  { %v560_v24 = vpop.permute.xlu0 %559 }
 0x859   :  { %v562_v25 = vadd.f32 %v560_v24, %v556_v23 }
 0x85b   :  { %896 = vtanh.f32 %v562_v25 }
 0x861   :  { %v897_v26 = vpop.eup %896 }
 0x862   :  { %v564_v27 = vmul.f32 %v897_v26, %v555_v21 }
 0x864   :  { %566 = vrot.lane.b32.xlu1 %v564_v27, %s971_s2 }
 0x8d6   :  { %v567_v34 = vpop.permute.xlu1 %566 }
 0x8d7   :  { %847 = vmatmul.msk.f32.vlgmr.msra.gmra.mxu2 %vm232_vm3, %v567_v34  ;;  %848 = vmatmul.msk.f32.vlgmr.msra.gmra.mxu3 %vm232_vm3, %v567_v34 }
 0x95a   :  { %v587_v28 = vpop.f32.mrf.mxu2  ;;  %v607_v29 = vpop.f32.mrf.mxu3 }
 0x95b   :  { %v588_v30 = vadd.f32 %v587_v28, %v123_v36  ;;  %v608_v31 = vadd.f32 %v607_v29, %v167_v35  ;;  %v769_v36 = vld [vmem:[%s1419_s4 + $0x30] sm:$0xff]  ;;  %v768_v28 = vld [vmem:[%s1419_s4 + $0x28] sm:$0xff]  ;;  %v766_v29 = vld [vmem:[%s1419_s4 + $0x18] sm:$0xff] }
 0x95c   :  { %789 = vmatpush.msrb.mxu0 %v769_v36 }
 0x95d   :  { %v610_v32 = vmul.f32 0.5, %v588_v30  ;;  %v611_v33 = vmul.f32 0.5, %v608_v31  ;;  %v765_v30 = vld [vmem:[%s1419_s4 + $0x10] sm:$0xff] }
 0x95e   :  { %790 = vmatpush.msrb.mxu0 %v768_v28 }
 0x95f   :  { %898 = vtanh.f32 %v610_v32  ;;  %v613_v39 = vsel %vm197_vm1, %v608_v31, %v611_v33  ;;  %v764_v31 = vld [vmem:[%s1419_s4 + $0x8] sm:$0xff]  ;;  %v763_v32 = vld [vmem:[%s1419_s4] sm:$0xff] }
 0x960   :  { %900 = vtanh.f32 %v613_v39  ;;  %791 = vmatpush.msrb.mxu0 %v767_v15 }
 0x962   :  { %792 = vmatpush.msrb.mxu0 %v766_v29 }
 0x964   :  { %793 = vmatpush.msrb.mxu0 %v765_v30 }
 0x965   :  { %v899_v40 = vpop.eup %898 }
 0x966   :  { %v901_v41 = vpop.eup %900  ;;  %v616_v42 = vmul.f32 0.5, %v899_v40  ;;  %794 = vmatpush.msrb.mxu0 %v764_v31 }
 0x967   :  { %v617_v43 = vmul.f32 0.5, %v901_v41 }
 0x968   :  { %v618_v45 = vadd.f32 0.5, %v616_v42  ;;  %795 = vmatpush.msrb.mxu0 %v763_v32 }
 0x969   :  { %v619_v44 = vadd.f32 0.5, %v617_v43 }
 0x96a   :  { %v622_v48 = vmul.f32 %v618_v45, %v562_v25 }
 0x96b   :  { %v621_v46 = vsel %vm197_vm1, %v901_v41, %v619_v44  ;;  %v861_v44 = vld [vmem:[%s1420_s5] ss:$0 sm:$0xff] }
 0x96c   :  { %v623_v47 = vmul.f32 %v621_v46, %v618_v45 }
 0x96e   :  { %625 = vrot.lane.b32.xlu2 %v623_v47, %s971_s2 }
 0x9c8   :  { %v626_v37 = vpop.permute.xlu2 %625 }
 0x9c9   :  { %v628_v38 = vadd.f32 %v626_v37, %v622_v48 }
 0x9cb   :  { %902 = vtanh.f32 %v628_v38 }
 0x9d1   :  { %v903_v49 = vpop.eup %902 }
 0x9d2   :  { %v630_v50 = vmul.f32 %v903_v49, %v621_v46 }
 0x9d4   :  { %632 = vrot.lane.b32.xlu0 %v630_v50, %s971_s2 }
 0xa46   :  { %v633_v51 = vpop.permute.xlu0 %632 }
 0xa47   :  { %849 = vmatmul.msk.f32.vlgmr.msra.gmra.mxu0 %vm232_vm3, %v633_v51  ;;  %850 = vmatmul.msk.f32.vlgmr.msrb.gmra.mxu1 %vm232_vm3, %v633_v51 }
 0xac4   :  { %v653_v54 = vpop.f32.mrf.mxu0  ;;  %v673_v55 = vpop.f32.mrf.mxu1 }
 0xac5   :  { %v654_v56 = vadd.f32 %v653_v54, %v126_v53  ;;  %v674_v57 = vadd.f32 %v673_v55, %v170_v52 }
 0xac7   :  { %v676_v58 = vmul.f32 0.5, %v654_v56  ;;  %v677_v59 = vmul.f32 0.5, %v674_v57 }
 0xac9   :  { %904 = vtanh.f32 %v676_v58  ;;  %v679_v60 = vsel %vm197_vm1, %v674_v57, %v677_v59 }
 0xaca   :  { %906 = vtanh.f32 %v679_v60 }
 0xacf   :  { %v905_v61 = vpop.eup %904 }
 0xad0   :  { %v907_v62 = vpop.eup %906  ;;  %v682_v2 = vmul.f32 0.5, %v905_v61 }
 0xad1   :  { %v683_v3 = vmul.f32 0.5, %v907_v62 }
 0xad2   :  { %v684_v63 = vadd.f32 0.5, %v682_v2 }
 0xad3   :  { %v685_v4 = vadd.f32 0.5, %v683_v3 }
 0xad4   :  { %v688_v6 = vmul.f32 %v684_v63, %v628_v38 }
 0xad5   :  { %v687_v0 = vsel %vm197_vm1, %v907_v62, %v685_v4 }
 0xad6   :  { %v689_v5 = vmul.f32 %v687_v0, %v684_v63 }
 0xad8   :  { %691 = vrot.lane.b32.xlu1 %v689_v5, %s971_s2 }
 0xb4a   :  { %v692_v7 = vpop.permute.xlu1 %691 }
 0xb4b   :  { %v694_v10 = vadd.f32 %v692_v7, %v688_v6 }
 0xb4d   :  { %908 = vtanh.f32 %v694_v10 }
 0xb53   :  { %v909_v11 = vpop.eup %908 }
 0xb54   :  { %v696_v12 = vmul.f32 %v909_v11, %v687_v0 }
 0xb56   :  { %698 = vrot.lane.b32.xlu2 %v696_v12, %s971_s2 }
 0xbb0   :  { %v699_v14 = vpop.permute.xlu2 %698 }
 0xbb1   :  { %851 = vmatmul.msk.f32.vlgmr.msrb.gmra.mxu2 %vm232_vm3, %v699_v14  ;;  %852 = vmatmul.msk.f32.vlgmr.msrb.gmra.mxu3 %vm232_vm3, %v699_v14 }
 0xc34   :  { %v719_v18 = vpop.f32.mrf.mxu2  ;;  %v739_v19 = vpop.f32.mrf.mxu3 }
 0xc35   :  { %v720_v20 = vadd.f32 %v719_v18, %v129_v16  ;;  %v740_v21 = vadd.f32 %v739_v19, %v173_v17 }
 0xc37   :  { %v742_v22 = vmul.f32 0.5, %v720_v20  ;;  %v743_v23 = vmul.f32 0.5, %v740_v21 }
 0xc39   :  { %910 = vtanh.f32 %v742_v22  ;;  %v745_v24 = vsel %vm197_vm1, %v740_v21, %v743_v23 }
 0xc3a   :  { %912 = vtanh.f32 %v745_v24 }
 0xc3f   :  { %v911_v25 = vpop.eup %910 }
 0xc40   :  { %v913_v26 = vpop.eup %912  ;;  %v748_v27 = vmul.f32 0.5, %v911_v25 }
 0xc41   :  { %v749_v34 = vmul.f32 0.5, %v913_v26 }
 0xc42   :  { %v750_v8 = vadd.f32 0.5, %v748_v27 }
 0xc43   :  { %v751_v35 = vadd.f32 0.5, %v749_v34 }
 0xc44   :  { %v754_v33 = vmul.f32 %v750_v8, %v694_v10 }
 0xc45   :  { %v753_v9 = vsel %vm197_vm1, %v913_v26, %v751_v35 }
 0xc46   :  { %v755_v13 = vmul.f32 %v753_v9, %v750_v8 }
 0xc48   :  { %757 = vrot.lane.b32.xlu0 %v755_v13, %s971_s2 }
 0xcba   :  { %v758_v39 = vpop.permute.xlu0 %757 }
 0xcbb   :  { %v760_v40 = vadd.f32 %v758_v39, %v754_v33 }
 0xcbd   :  { %914 = vtanh.f32 %v760_v40 }
 0xcc3   :  { %v915_v41 = vpop.eup %914 }
 0xcc4   :  { %v762_v42 = vmul.f32 %v915_v41, %v753_v9 }
 0xcc6   :  { %776 = vrot.lane.b32.xlu1 %v762_v42, %s971_s2 }
 0xd38   :  { %v777_v43 = vpop.permute.xlu1 %776 }
 0xd39   :  { %853 = vmatmul.msk.f32.vlgmr.msrb.gmra.mxu0 %vm232_vm3, %v777_v43 }
 0xdb6   :  { %v797_v45 = vpop.f32.mrf.mxu0 }
 0xdb7   :  { %v798_v46 = vadd.f32 %v861_v44, %v797_v45 }
 0xdb9   :  { %801 = vst.msk [vmem:[#allocation5] sm:$0xff] %vm800_vm4, %v798_v46 }
 0xdba   :  { %812 = dma.vmem_to_hbm [thread:$0]  %s808_s21, 128, %s810_s23, [#allocation4]  }
 0xdbb   :  { %966 = dma.done.wait [#allocation4], 128  }
 0xdbc   :  { %967 = vsyncadd [#allocation4], 4294967168 }
 0xdbd   :  { %817 = vsyncpa [#allocation3], 1 }
 0xdbe   :  { %818 = vsyncpa [#allocation4], 1 }

</bundles_post_ra>
